<compile_context>
chip_gen: v5e
topology: v5e:2x2
jax: 0.10.0
libtpu: 0.0.40
codegen_flags: <defaults>
</compile_context>

<pallas_src>
import functools

import jax
import jax.numpy as jnp
from jax.experimental import pallas as pl
from jax.experimental.pallas import tpu as pltpu


# ---------------------------------------------------------------------------
# Kernel 1: streaming joint accumulation  partial[c, b] += x_tile @ x_tf_tile.T
# ---------------------------------------------------------------------------
def _joint_accum_kernel(*refs, hw, tn, t_per_split, has_mask, needs_tail):
    if has_mask:
        x_ref, xtf_ref, m_ref, out_ref = refs
    else:
        x_ref, xtf_ref, out_ref = refs
        m_ref = None

    c = pl.program_id(0)   # reduction-split axis (TensorCore sharding)
    t = pl.program_id(2)   # per-split HW-tile index (reduction axis)

    @pl.when(t == 0)
    def _init():
        out_ref[...] = jnp.zeros_like(out_ref)

    x = x_ref[...]         # (K, TN), native dtype
    xtf = xtf_ref[...]     # (K, TN)

    if has_mask:
        m = m_ref[...].astype(x.dtype)   # (K, TN) or (1, TN) -> broadcasts
        x = x * m
        xtf = xtf * m

    if needs_tail:
        # Single (1, TN) validity vector, broadcast over the sublane axis.
        # Zero BOTH streams: the overhang of a partial / duplicated block may
        # contain arbitrary stale VMEM bits (possibly NaN), and 0*NaN = NaN.
        t_glob = c * t_per_split + t
        col = jax.lax.broadcasted_iota(jnp.int32, (1, tn), 1)
        valid = (t_glob * tn + col) < hw
        x = jnp.where(valid, x, jnp.zeros_like(x))
        xtf = jnp.where(valid, xtf, jnp.zeros_like(xtf))

    # (K, TN) x (K, TN) contracted over the lane axis -> (K, K) on the MXU.
    # HIGHEST precision is free here (kernel is HBM-bound, MXU mostly idle).
    out_ref[...] += jax.lax.dot_general(
        x, xtf, (((1,), (1,)), ((), ())),
        precision=jax.lax.Precision.HIGHEST,
        preferred_element_type=jnp.float32)


# ---------------------------------------------------------------------------
# Kernel 2: tiny O(K^2) epilogue — normalize, (optional) symmetrize, IIC terms.
# ---------------------------------------------------------------------------
def _epilogue_kernel(pj_ref, out_ref, *, inv_n, lamda, eps, symmetric, inv_t2):
    p = jnp.sum(pj_ref[...].astype(jnp.float32), axis=0) * inv_n   # (K, K)
    if symmetric:
        p = (p + p.T) * 0.5
    # PyTorch views p as (1,1,K,K): sum(dim=2) -> over rows, sum(dim=3) -> cols.
    p_i = jnp.sum(p, axis=0, keepdims=True)   # (1, K)
    p_j = jnp.sum(p, axis=1, keepdims=True)   # (K, 1)
    loss = -p * (jnp.log(p + eps)
                 - lamda * jnp.log(p_i + eps)
                 - lamda * jnp.log(p_j + eps))
    out_ref[0, 0] = jnp.sum(loss) * inv_t2


# ---------------------------------------------------------------------------
# Tile / VMEM budgeting helpers (generation- and sublane-padding-aware).
# ---------------------------------------------------------------------------
def _sublane_multiple(itemsize):
    # f32 packs 8 rows per sublane tile, bf16 16, int8/fp8 32.
    return max(8, 32 // max(1, itemsize))


def _vmem_budget_and_cap():
    phys = 128 * 1024 * 1024
    try:
        info = pltpu.get_tpu_info()
        phys = int(getattr(info, "vmem_capacity_bytes", phys))
    except Exception:
        pass
    if phys <= 64 * 1024 * 1024:
        # v7x: 64 MiB physical per TensorCore — keep headroom.
        return 14 * 1024 * 1024, 48 * 1024 * 1024
    # v5e / v6e: 128 MiB physical — larger lane-dense tiles keep DMA near roofline.
    return 28 * 1024 * 1024, 100 * 1024 * 1024


def _choose_hw_tile(hw, k, itemsize, mask_rows, budget):
    sub = _sublane_multiple(itemsize)
    pad = lambda r: -(-r // sub) * sub
    rows = 2 * pad(k) + (pad(mask_rows) if mask_rows else 0)   # padded sublane rows
    per_lane = 2 * rows * itemsize        # double-buffered bytes per lane column
    tn = budget // max(1, per_lane)
    if tn >= hw:
        return hw                         # full-extent last dim: always legal
    tn = max(128, (tn // 128) * 128)      # lane-aligned tile
    # Prefer a lane-aligned tile that divides HW exactly (drops the tail mask),
    # as long as it doesn't shrink the tile by more than 2x.
    cand = tn
    while cand >= max(128, tn // 2):
        if hw % cand == 0:
            return cand
        cand -= 128
    return tn


# ---------------------------------------------------------------------------
# Public wrapper.
# ---------------------------------------------------------------------------
def iid_segmentation_loss(x_out, x_tf_out, mask=None, *, lamda=1.0, padding=0,
                          eps=1e-5, symmetric=False, hw_tile=None):
    """JAX/Pallas equivalent of IIDSegmentationLoss.forward (padding == 0)."""
    if padding != 0:
        # TODO(synk): padding>0 branch (compute_joint_2D via F.conv2d joint) not implemented.
        raise NotImplementedError("only the padding == 0 path is implemented")

    b, k, h, w = x_out.shape
    hw = h * w
    n = b * hw
    t_side = 2 * padding + 1

    # Free views of contiguous NCHW -- no transpose, no extra HBM round trip.
    x = x_out.reshape(b, k, hw)
    xtf = x_tf_out.reshape(b, k, hw)

    has_mask = mask is not None
    mb = mk = 0
    if has_mask:
        mask = jnp.asarray(mask, dtype=x.dtype)
        if (mask.ndim != 4 or mask.shape[2:] != (h, w)
                or mask.shape[0] not in (1, b) or mask.shape[1] not in (1, k)):
            raise ValueError(f"unsupported mask shape {mask.shape}")
        mb, mk = mask.shape[0], mask.shape[1]
        m3 = mask.reshape(mb, mk, hw)

    itemsize = jnp.dtype(x.dtype).itemsize
    budget, vmem_cap = _vmem_budget_and_cap()
    if hw_tile is not None:
        tn = min(int(hw_tile), hw)
    else:
        tn = _choose_hw_tile(hw, k, itemsize, mk if has_mask else 0, budget)
    num_t = pl.cdiv(hw, tn)

    # Split the HW-tile reduction across a leading "parallel" axis when the batch
    # axis alone cannot balance v7x's two TensorCores (B == 1 or odd).  On
    # single-TC chips this only adds one extra tiny (K, K) init/writeback.
    n_split = 2 if (b % 2 == 1 and num_t >= 2) else 1
    t_per = pl.cdiv(num_t, n_split)
    padded_grid = (n_split * t_per != num_t)
    needs_tail = (hw % tn != 0) or padded_grid

    def tile_idx(c, t):
        g = c * t_per + t
        if padded_grid:
            # Duplicated (fully-masked) tile for the shorter split: clamp in-bounds.
            g = jnp.minimum(g, num_t - 1)
        return g

    in_specs = [pl.BlockSpec((None, k, tn), lambda c, bb, t: (bb, 0, tile_idx(c, t))),
                pl.BlockSpec((None, k, tn), lambda c, bb, t: (bb, 0, tile_idx(c, t)))]
    operands = [x, xtf]
    if has_mask:
        if mb == 1:
            m_index = lambda c, bb, t: (0, 0, tile_idx(c, t))
        else:
            m_index = lambda c, bb, t: (bb, 0, tile_idx(c, t))
        in_specs.append(pl.BlockSpec((None, mk, tn), m_index))
        operands.append(m3)

    # VMEM accounting with sublane padding (ceil to the dtype's sublane multiple).
    sub = _sublane_multiple(itemsize)
    pad = lambda r: -(-r // sub) * sub
    stream_rows = 2 * pad(k) + (pad(mk) if has_mask else 0)
    acc_bytes = 2 * (-(-k // 8) * 8) * (-(-k // 128) * 128) * 4
    vmem_needed = 2 * stream_rows * tn * itemsize + acc_bytes
    vmem_limit = int(min(vmem_cap, max(32 * 1024 * 1024, vmem_needed + (4 << 20))))

    compiler_params = pltpu.CompilerParams(
        dimension_semantics=("parallel", "parallel", "arbitrary"),
        vmem_limit_bytes=vmem_limit)

    mask_bytes = (mb * mk * hw * itemsize) if has_mask else 0
    cost = pl.CostEstimate(
        flops=2 * k * k * n,
        transcendentals=0,
        bytes_accessed=2 * k * n * itemsize + mask_bytes + n_split * b * k * k * 4)

    # Kernel 1: streaming joint accumulation -> (n_split, B, K, K) f32 partials.
    partial_joint = pl.pallas_call(
        functools.partial(_joint_accum_kernel, hw=hw, tn=tn, t_per_split=t_per,
                          has_mask=has_mask, needs_tail=needs_tail),
        grid=(n_split, b, t_per),
        in_specs=in_specs,
        out_specs=pl.BlockSpec((None, None, k, k), lambda c, bb, t: (c, bb, 0, 0)),
        out_shape=jax.ShapeDtypeStruct((n_split, b, k, k), jnp.float32),
        compiler_params=compiler_params,
        cost_estimate=cost,
    )(*operands)

    # Kernel 2: tiny epilogue on the (n_split*B, K, K) partials -> scalar loss.
    nb = n_split * b
    loss = pl.pallas_call(
        functools.partial(_epilogue_kernel, inv_n=1.0 / float(n),
                          lamda=float(lamda), eps=float(eps),
                          symmetric=bool(symmetric),
                          inv_t2=1.0 / float(t_side * t_side)),
        in_specs=[pl.BlockSpec((nb, k, k), lambda: (0, 0, 0))],
        out_specs=pl.BlockSpec((1, 1), lambda: (0, 0)),
        out_shape=jax.ShapeDtypeStruct((1, 1), jnp.float32),
    )(partial_joint.reshape(nb, k, k))
    return loss[0, 0]


# ---------------------------------------------------------------------------
# Pure-JAX reference of the same math (padding == 0 path).
# ---------------------------------------------------------------------------
def _reference_jax(x_out, x_tf_out, mask=None, *, lamda=1.0, eps=1e-5, symmetric=False):
    if mask is not None:
        x_out = x_out * mask
        x_tf_out = x_tf_out * mask
    b, k, h, w = x_out.shape
    n = b * h * w
    x = jnp.transpose(x_out, (1, 0, 2, 3)).reshape(k, n)
    xtf = jnp.transpose(x_tf_out, (1, 0, 2, 3)).reshape(k, n)
    p = (x @ xtf.T) / n
    if symmetric:
        p = (p + p.T) / 2.0
    p_i = jnp.sum(p, axis=0, keepdims=True)
    p_j = jnp.sum(p, axis=1, keepdims=True)
    loss = -p * (jnp.log(p + eps) - lamda * jnp.log(p_i + eps)
                 - lamda * jnp.log(p_j + eps))
    return jnp.sum(loss)


if __name__ == "__main__":
    key = jax.random.PRNGKey(0)
    k1, k2, k3, k4, k5, k6, k7 = jax.random.split(key, 7)

    # Small NCHW segmentation-probability shapes consistent with the module.
    B, K, H, W = 2, 4, 16, 16
    x_out = jax.nn.softmax(jax.random.normal(k1, (B, K, H, W), jnp.float32), axis=1)
    x_tf_out = jax.nn.softmax(jax.random.normal(k2, (B, K, H, W), jnp.float32), axis=1)

    # 1) default path (padding=0, no mask).
    loss = iid_segmentation_loss(x_out, x_tf_out)
    jax.block_until_ready(loss)
    ref = _reference_jax(x_out, x_tf_out)
    assert jnp.allclose(loss, ref, atol=1e-4, rtol=1e-4), (loss, ref)

    # 2) fused-mask path.
    mask = (jax.random.uniform(k3, (B, 1, H, W)) > 0.3).astype(jnp.float32)
    loss_m = iid_segmentation_loss(x_out, x_tf_out, mask)
    jax.block_until_ready(loss_m)
    ref_m = _reference_jax(x_out, x_tf_out, mask)
    assert jnp.allclose(loss_m, ref_m, atol=1e-4, rtol=1e-4), (loss_m, ref_m)

    # 3) multi-tile reduction with a ragged tail (HW=400, tile=256 -> 2 tiles).
    B2, K2, H2, W2 = 2, 4, 20, 20
    x2 = jax.nn.softmax(jax.random.normal(k4, (B2, K2, H2, W2), jnp.float32), axis=1)
    x2_tf = jax.nn.softmax(jax.random.normal(k5, (B2, K2, H2, W2), jnp.float32), axis=1)
    loss2 = iid_segmentation_loss(x2, x2_tf, hw_tile=256)
    jax.block_until_ready(loss2)
    ref2 = _reference_jax(x2, x2_tf)
    assert jnp.allclose(loss2, ref2, atol=1e-4, rtol=1e-4), (loss2, ref2)

    # 4) B=1 (odd): two-way reduction split with an uneven tile count
    #    (HW=640, tile=256 -> 3 tiles -> splits of 2 and 2 with one fully-masked
    #    duplicate), plus symmetric=True and lamda!=1.
    B3, K3, H3, W3 = 1, 4, 20, 32
    x3 = jax.nn.softmax(jax.random.normal(k6, (B3, K3, H3, W3), jnp.float32), axis=1)
    x3_tf = jax.nn.softmax(jax.random.normal(k7, (B3, K3, H3, W3), jnp.float32), axis=1)
    loss3 = iid_segmentation_loss(x3, x3_tf, hw_tile=256, lamda=1.5, symmetric=True)
    jax.block_until_ready(loss3)
    ref3 = _reference_jax(x3, x3_tf, lamda=1.5, symmetric=True)
    assert jnp.allclose(loss3, ref3, atol=1e-4, rtol=1e-4), (loss3, ref3)

    print("KERNEL_OK")
</pallas_src>

<mosaic_0001>
module attributes {stable_mosaic.version = 11 : i64} {
  func.func @_joint_accum_kernel(%arg0: i32, %arg1: i32, %arg2: i32, %arg3: memref<1x4x256xf32, #tpu.memory_space<vmem>>, %arg4: memref<1x4x256xf32, #tpu.memory_space<vmem>>, %arg5: memref<1x1x4x4xf32, #tpu.memory_space<vmem>>) attributes {dimension_semantics = [#tpu.dimension_semantics<parallel>, #tpu.dimension_semantics<parallel>, #tpu.dimension_semantics<arbitrary>], iteration_bounds = array<i64: 1, 2, 1>, scalar_prefetch = 0 : i64, scratch_operands = 0 : i64, tpu.core_type = #tpu.core_type<tc>, window_params = [{transform_indices = @transform_0, window_bounds = array<i64: 1, 4, 256>}, {transform_indices = @transform_1, window_bounds = array<i64: 1, 4, 256>}, {transform_indices = @transform_2, window_bounds = array<i64: 1, 1, 4, 4>}]} {
    %c0_i32 = arith.constant 0 : i32
    %0 = arith.cmpi eq, %arg2, %c0_i32 : i32
    %1 = arith.extui %0 : i1 to i32
    %c0_i32_0 = arith.constant 0 : i32
    %2 = arith.cmpi ne, %1, %c0_i32_0 : i32
    scf.if %2 {
      %cst_14 = arith.constant 0.000000e+00 : f32
      %14 = vector.broadcast %cst_14 : f32 to vector<4x4xf32>
      %c0_15 = arith.constant 0 : index
      %c0_16 = arith.constant 0 : index
      %c0_17 = arith.constant 0 : index
      %c0_18 = arith.constant 0 : index
      %15 = vector.load %arg5[%c0_15, %c0_16, %c0_17, %c0_18] : memref<1x1x4x4xf32, #tpu.memory_space<vmem>>, vector<1x1x4x4xf32>
      %16 = vector.shape_cast %15 : vector<1x1x4x4xf32> to vector<4x4xf32>
      %17 = vector.shape_cast %14 : vector<4x4xf32> to vector<1x1x4x4xf32>
      tpu.vector_store %arg5[%c0_15, %c0_16, %c0_17, %c0_18], %17 {strides = array<i32>} : memref<1x1x4x4xf32, #tpu.memory_space<vmem>>, vector<1x1x4x4xf32>,
    } else {
    }
    %c0 = arith.constant 0 : index
    %c0_1 = arith.constant 0 : index
    %c0_2 = arith.constant 0 : index
    %3 = vector.load %arg3[%c0, %c0_1, %c0_2] : memref<1x4x256xf32, #tpu.memory_space<vmem>>, vector<1x4x256xf32>
    %4 = vector.shape_cast %3 : vector<1x4x256xf32> to vector<4x256xf32>
    %c0_3 = arith.constant 0 : index
    %c0_4 = arith.constant 0 : index
    %c0_5 = arith.constant 0 : index
    %5 = vector.load %arg4[%c0_3, %c0_4, %c0_5] : memref<1x4x256xf32, #tpu.memory_space<vmem>>, vector<1x4x256xf32>
    %6 = vector.shape_cast %5 : vector<1x4x256xf32> to vector<4x256xf32>
    %c0_6 = arith.constant 0 : index
    %c0_7 = arith.constant 0 : index
    %c0_8 = arith.constant 0 : index
    %c0_9 = arith.constant 0 : index
    %7 = vector.load %arg5[%c0_6, %c0_7, %c0_8, %c0_9] : memref<1x1x4x4xf32, #tpu.memory_space<vmem>>, vector<1x1x4x4xf32>
    %8 = vector.shape_cast %7 : vector<1x1x4x4xf32> to vector<4x4xf32>
    %cst = arith.constant dense<0.000000e+00> : vector<4x4xf32>
    %9 = tpu.matmul %4, %6, %cst {dimension_numbers = #tpu.dot_dimension_numbers<[1], [1], [0], [0], [0, 0, 1, 0], [], []>, precision = #tpu.contract_precision<fp32>} : vector<4x256xf32>, vector<4x256xf32>, vector<4x4xf32> -> vector<4x4xf32>
    %10 = arith.addf %8, %9 : vector<4x4xf32>
    %c0_10 = arith.constant 0 : index
    %c0_11 = arith.constant 0 : index
    %c0_12 = arith.constant 0 : index
    %c0_13 = arith.constant 0 : index
    %11 = vector.load %arg5[%c0_10, %c0_11, %c0_12, %c0_13] : memref<1x1x4x4xf32, #tpu.memory_space<vmem>>, vector<1x1x4x4xf32>
    %12 = vector.shape_cast %11 : vector<1x1x4x4xf32> to vector<4x4xf32>
    %13 = vector.shape_cast %10 : vector<4x4xf32> to vector<1x1x4x4xf32>
    tpu.vector_store %arg5[%c0_10, %c0_11, %c0_12, %c0_13], %13 {strides = array<i32>} : memref<1x1x4x4xf32, #tpu.memory_space<vmem>>, vector<1x1x4x4xf32>,
    return
  }
  func.func @transform_0(%arg0: i32, %arg1: i32, %arg2: i32) -> (i32, i32, i32) {
    %c1_i32 = arith.constant 1 : i32
    %0 = arith.muli %arg0, %c1_i32 : i32
    %1 = arith.addi %0, %arg2 : i32
    %c0_i32 = arith.constant 0 : i32
    %c0_i32_0 = arith.constant 0 : i32
    return %arg1, %c0_i32, %1 : i32, i32, i32
  }
  func.func @transform_1(%arg0: i32, %arg1: i32, %arg2: i32) -> (i32, i32, i32) {
    %c1_i32 = arith.constant 1 : i32
    %0 = arith.muli %arg0, %c1_i32 : i32
    %1 = arith.addi %0, %arg2 : i32
    %c0_i32 = arith.constant 0 : i32
    %c0_i32_0 = arith.constant 0 : i32
    return %arg1, %c0_i32, %1 : i32, i32, i32
  }
  func.func @transform_2(%arg0: i32, %arg1: i32, %arg2: i32) -> (i32, i32, i32, i32) {
    %c0_i32 = arith.constant 0 : i32
    %c0_i32_0 = arith.constant 0 : i32
    %c0_i32_1 = arith.constant 0 : i32
    return %arg0, %arg1, %c0_i32, %c0_i32_0 : i32, i32, i32, i32
  }
}

</mosaic_0001>

<bundles_post_ra>
// kernel: tpu_custom_call.1
= control target key start
LH: loop header
LB: loop body
LE: loop exit
PB: predicated region body
PF: predicated region fallthrough
CT: control target
= control target key end

     0   :  { %7 = vsyncpa [#allocation3], 0  ;;  %s1078_s0 = inlined_call_operand.hbm [shape: f32[2,4,256], index: 0, kind: input, shape index: {}]   ;;  %s1079_s1 = inlined_call_operand.hbm [shape: f32[2,4,256], index: 1, kind: input, shape index: {}]   ;;  %s1080_s2 = inlined_call_operand.hbm [shape: f32[1,2,4,4], index: 2, kind: output, shape index: {}]  }
   0x1   :  { %9 = vsyncpa [#allocation3 + $0x1], 0 }
   0x2   :  { %10 = vsyncpa [#allocation6], 0 }
   0x3   :  { %12 = vsyncpa [#allocation6 + $0x1], 0 }
   0x4   :  { %13 = vsyncpa [#allocation4], 0 }
   0x5   :  { %15 = vsyncpa [#allocation4 + $0x1], 0  ;;  %s941_s9 = smov 0   ;;  %s943_s10 = smov 0  }
   0x6   :  { %s945_s11 = smov 0   ;;  %s947_s12 = smov 0  }
   0x7   :  { %s949_s13 = smov 0   ;;  %s951_s14 = smov 0  }
   0x8 LB: > { %s689_s15 = sadd.s32 4294967295, %s923_s14   ;;  %s690_s16 = sadd.s32 4294967294, %s923_s14   ;;  %s923_s14 = sphi %s951_s14, %s21_s14   ;;  %s919_s13 = sphi %s949_s13, %s1089_s13   ;;  %s915_s12 = sphi %s947_s12, %s1088_s12   ;;  %s911_s11 = sphi %s945_s11, %s1087_s11   ;;  %s907_s10 = sphi %s943_s10, %s1086_s10   ;;  %s903_s9 = sphi %s941_s9, %s1085_s9  }
   0x9   : > { %s36_s17 = sadd.s32 1, %s919_s13  ;;  %s51_s18 = sadd.s32 1, %s911_s11 }
   0xa   : > { %p38_p0 = scmp.ge.s32.totalorder %s36_s17, 2  ;;  %p58_p1 = scmp.ne.s32.totalorder %s911_s11, %s907_s10 }
   0xb   : > { %p59_p2 = scmp.eq.s32.totalorder %s923_s14, 0  ;;  %p64_p3 = scmp.ne.s32.totalorder %s907_s10, %s903_s9 }
   0xc   : > { %s1091_s17 = smov (%p38_p0, %s36_s17), 0  ;;  %p65_p5 = scmp.eq.s32.totalorder %s689_s15, 0 }
   0xd   : > { %p982_p4 = por %p59_p2, %p58_p1  ;;  %s46_s20 = ssub.s32 %s919_s13, %s1091_s17 }
   0xe   : > { %p120_p6 = scmp.eq.s32.totalorder %s689_s15, 1  ;;  %p49_p7 = scmp.eq.s32.totalorder %s46_s20, 0 }
   0xf   : > { %p988_p8 = por %p65_p5, %p64_p3  ;;  %p126_p10 = scmp.eq.s32.totalorder %s690_s16, 1 }
  0x10   : > { %p992_p9 = por %p120_p6, %p58_p1  ;;  %p692_p12 = scmp.ge.s32.totalorder %s923_s14, 2 }
  0x11   : > { %s997_s23 = scalar_select %p49_p7, %s911_s11, %s51_s18  }
  0x12   : > { %p999_p11 = por %p126_p10, %p64_p3  ;;  %p726_p13 = scmp.lt.s32.totalorder %s923_s14, 2 }
  0x13   : > { %s146_s25 = sand.u32 1, %s911_s11   ;;  %s707_s27 = sshll.u32 %s919_s13, 3 }
  0x14   : > { %s693_s26 = sshll.u32 %s146_s25, 3  ;;  %s158_s30 = scalar_lea.hbm %s1078_s0, %s707_s27 }
  0x15   : > { %s150_s3 = scalar_lea.vmem [#allocation2], %s693_s26  ;;  %s160_s5 = sshll.u32 %s158_s30, 4  ;;  %s161_s5 = int_to_ptr.hbm [resolvable:$true] %s160_s5 }
  0x16   : > { %s162_s4 = sshll.u32 %s150_s3, 4  ;;  %p716_p0 = pnand %p726_p13, %p982_p4  ;;  %s163_s4 = int_to_ptr.vmem [resolvable:$true] %s162_s4 }
  0x17   : > { %p699_p1 = scmp.ge.s32.totalorder %s923_s14, 1  ;;  %p190_p2 = scmp.lt.s32.totalorder %s923_s14, 3 }
  0x18   : > { %s147_s6 = scalar_lea.sflag [#allocation3], %s146_s25  ;;  %s181_s15 = scalar_lea.hbm %s1079_s1, %s707_s27 }
  0x19   : > { %718 = dma.hbm_to_vmem [thread:$0]  (!%p716_p0), %s161_s5, 128, %s163_s4, %s147_s6  }
  0x1a   : > { %p191_p3 = pnand %p699_p1, %p190_p2  ;;  %s173_s16 = scalar_lea.vmem [#allocation5], %s693_s26 }
  0x1b   : > { %s185_s18 = sshll.u32 %s173_s16, 4  ;;  %s183_s20 = sshll.u32 %s181_s15, 4  ;;  %s186_s18 = int_to_ptr.vmem [resolvable:$true] %s185_s18  ;;  %s184_s20 = int_to_ptr.hbm [resolvable:$true] %s183_s20 }
  0x1c   : > { %s170_s28 = scalar_lea.sflag [#allocation6], %s146_s25  ;;  %194 = sbr.rel (%p191_p3) target bundleno = 219 (0xdb), region = 28 }
  0x1d   : > { %721 = dma.hbm_to_vmem [thread:$0]  (!%p716_p0), %s184_s20, 128, %s186_s18, %s170_s28  }
  0x1e   : > { %s1018_s19 = sand.u32 (!%p191_p3), 1, %s907_s10  }
  0x1f   : > { %s700_s29 = sshll.u32 (!%p191_p3), %s1018_s19, 3  ;;  %s197_s30 = scalar_lea.sflag (!%p191_p3), [#allocation3], %s1018_s19 }
  0x20   : > { %s200_s3 = scalar_lea.vmem (!%p191_p3), [#allocation2], %s700_s29 }
  0x21   : > { %890 = dma.done.wait (%p988_p8), %s197_s30, 128  }
  0x22   : > { %892 = vsyncadd (%p988_p8), %s197_s30, 4294967168  ;;  %s207_s26 = scalar_lea.sflag [#allocation6], %s1018_s19  ;;  %s210_s25 = scalar_lea.vmem [#allocation5], %s700_s29 }
  0x23   : > { %894 = dma.done.wait (%p988_p8), %s207_s26, 128  }
  0x24   : > { %896 = vsyncadd (%p988_p8), %s207_s26, 4294967168  ;;  %v247_v0 = vld [vmem:[%s200_s3] sm:$0xff]  ;;  %v248_v1 = vld [vmem:[%s210_s25] sm:$0xff]  ;;  %s702_s21 = sshll.u32 %s1018_s19, 2  ;;  %vm245_vm0 = vcmask 27648   ;;  %v925_v26 = vmov 0.0  }
  0x25   : > { %251 = vst [vmem:[#allocation1] ss:$2 sm:$0xff] %v247_v0  ;;  %s1032_s27 = scalar_lea.vmem [#allocation7], %s702_s21  ;;  %s704_s4 = sshll.u32 %s915_s12, 2 }
  0x26   : > { %246 = vst.msk [vmem:[%s1032_s27] sm:$0xf] %vm245_vm0, %v925_v26  ;;  %s570_s7 = scalar_lea.hbm %s1080_s2, %s704_s4  ;;  %s572_s8 = sshll.u32 %s1032_s27, 4  ;;  %s573_s8 = int_to_ptr.vmem [resolvable:$true] %s572_s8 }
  0x27   : > { %s574_s15 = sshll.u32 %s570_s7, 4  ;;  %s558_s12 = scalar_lea.sflag [#allocation4], %s1018_s19  ;;  %s575_s15 = int_to_ptr.hbm [resolvable:$true] %s574_s15 }
  0x28   : > { %s851_s16 = sshra.s32 %s575_s15, 4  ;;  %s857_s29 = scalar_lea.hbm %s1080_s2, 8  ;;  %s852_s16 = int_to_ptr.hbm [resolvable:$true] %s851_s16 }
  0x29   : > { %s853_s18 = scalar_lea.hbm %s852_s16, 4  ;;  %p858_p7 = scmp.lt.s32.totalorder %s852_s16, %s1080_s2 }
  0x2a   : > { %p854_p4 = scmp.ne.s32.totalorder %s852_s16, %s853_s18  ;;  %p859_p8 = scmp.lt.s32.totalorder %s857_s29, %s853_s18 }
  0x2c   : > { %v252_v2 = vld.sshfl [vmem:[#allocation1] sm:$0xff pattern:$0x75316420]  ;;  %v253_v3 = vld.sshfl [vmem:[#allocation1 + $0x8] sm:$0xff pattern:$0x75316420]  ;;  %p855_p5 = pnand %p854_p4, %p992_p9  ;;  %p860_p10 = por %p859_p8, %p858_p7 }
  0x2d   : > { %257 = vst [vmem:[#allocation1] ss:$2 sm:$0xff] %v248_v1  ;;  %v279_v4 = vand.u32 4294901760, %v252_v2  ;;  %v425_v6 = vand.u32 4294901760, %v253_v3  ;;  %v249_v49 = vld [vmem:[%s1032_s27] sm:$0xf] }
  0x2e   : > { %p856_p6 = pneg %p855_p5 }
  0x2f   : > { %v280_v5 = vsub.f32 %v252_v2, %v279_v4  ;;  %v426_v11 = vsub.f32 %v253_v3, %v425_v6 }
  0x30   : > { %p861_p13 = pnand %p860_p10, %p856_p6 }
  0x31   : > { %v281_v7 = vand.u32 4294901760, %v280_v5  ;;  %v427_v17 = vand.u32 4294901760, %v426_v11 }
  0x33   : > { %v282_v8 = vsub.f32 %v280_v5, %v281_v7  ;;  %v428_v22 = vsub.f32 %v426_v11, %v427_v17 }
  0x34   : > { %v258_v9 = vld.sshfl [vmem:[#allocation1] sm:$0xff pattern:$0x75316420]  ;;  %v259_v10 = vld.sshfl [vmem:[#allocation1 + $0x8] sm:$0xff pattern:$0x75316420] }
  0x35   : > { %v277_v12 = vand.u32 4294901760, %v258_v9  ;;  %v423_v13 = vand.u32 4294901760, %v259_v10  ;;  %v283_v14 = vand.u32 4294901760, %v282_v8  ;;  %v429_v25 = vand.u32 4294901760, %v428_v22 }
  0x37   : > { %v304_v15 = vsub.f32 %v258_v9, %v277_v12  ;;  %278 = vmatpush.xpose.msra.mxu0 %v277_v12  ;;  %354 = vmatpush.xpose.msra.mxu3 %v277_v12  ;;  %v450_v16 = vsub.f32 %v259_v10, %v423_v13 }
  0x39   : > { %331 = vmatpush.xpose.msra.mxu2 %v304_v15  ;;  %v305_v18 = vand.u32 4294901760, %v304_v15  ;;  %v451_v19 = vand.u32 4294901760, %v450_v16 }
  0x3a   : > { %284 = vmatmul.f32.vlgmr.msra.gmra.mxu0 %v283_v14  ;;  %358 = vmatmul.f32.vlgmr.msra.gmra.mxu3 %v281_v7 }
  0x3b   : > { %v306_v20 = vsub.f32 %v304_v15, %v305_v18  ;;  %380 = vmatpush.xpose.msrb.mxu0 %v305_v18  ;;  %v452_v21 = vsub.f32 %v450_v16, %v451_v19 }
  0x3c   : > { %334 = vmatmul.f32.vlgmr.msra.gmra.mxu2 %v280_v5 }
  0x3d   : > { %424 = vmatpush.xpose.msrb.mxu2 %v423_v13  ;;  %v307_v23 = vand.u32 4294901760, %v306_v20  ;;  %v453_v24 = vand.u32 4294901760, %v452_v21 }
  0x3f   : > { %477 = vmatpush.xpose.msra.mxu0 %v450_v16  ;;  %308 = vmatpush.xpose.msra.mxu1 %v307_v23 }
  0x40   : > { %454 = vmatpush.xpose.msrb.mxu3 %v453_v24 }
  0x41   : > { %526 = vmatpush.xpose.msra.mxu2 %v451_v19 }
  0x42   : > { %310 = vmatmul.f32.vlgmr.msra.gmra.mxu1 %v279_v4  ;;  %382 = vmatmul.f32.vlgmr.msrb.gmra.mxu0 %v279_v4 }
  0x43   : > { %402 = vmatpush.xpose.msrb.mxu1 %v277_v12  ;;  %456 = vmatmul.f32.vlgmr.msrb.gmra.mxu3 %v425_v6 }
  0x44   : > { %548 = vmatpush.xpose.msra.mxu3 %v423_v13  ;;  %430 = vmatmul.f32.vlgmr.msrb.gmra.mxu2 %v429_v25 }
  0x47   : > { %500 = vmatpush.xpose.msra.mxu1 %v423_v13 }
  0x4a   : > { %404 = vmatmul.f32.vlgmr.msrb.gmra.mxu1 %v279_v4  ;;  %480 = vmatmul.f32.vlgmr.msra.gmra.mxu0 %v426_v11 }
  0x4b   : > { %550 = vmatmul.f32.vlgmr.msra.gmra.mxu3 %v425_v6 }
  0x4c   : > { %528 = vmatmul.f32.vlgmr.msra.gmra.mxu2 %v425_v6 }
  0x52   : > { %504 = vmatmul.f32.vlgmr.msra.gmra.mxu1 %v427_v17 }
  0xb7   : > { %v285_v27 = vpop.f32.mrf.mxu0 }
  0xbd   : > { %v359_v28 = vpop.f32.mrf.mxu3 }
  0xbf   : > { %v311_v29 = vpop.f32.mrf.mxu1  ;;  %v335_v30 = vpop.f32.mrf.mxu2 }
  0xc0   : > { %v312_v31 = vadd.f32 %v311_v29, %v285_v27  ;;  %v383_v32 = vpop.f32.mrf.mxu0 }
  0xc2   : > { %v336_v33 = vadd.f32 %v335_v30, %v312_v31 }
  0xc4   : > { %v360_v34 = vadd.f32 %v359_v28, %v336_v33 }
  0xc6   : > { %v384_v35 = vadd.f32 %v383_v32, %v360_v34  ;;  %v457_v36 = vpop.f32.mrf.mxu3 }
  0xc7   : > { %v405_v37 = vpop.f32.mrf.mxu1  ;;  %v431_v38 = vpop.f32.mrf.mxu2 }
  0xc8   : > { %v406_v39 = vadd.f32 %v405_v37, %v384_v35  ;;  %v481_v41 = vpop.f32.mrf.mxu0 }
  0xca   : > { %v432_v40 = vadd.f32 %v431_v38, %v406_v39 }
  0xcc   : > { %v458_v42 = vadd.f32 %v457_v36, %v432_v40 }
  0xce   : > { %v482_v43 = vadd.f32 %v481_v41, %v458_v42  ;;  %v551_v47 = vpop.f32.mrf.mxu3 }
  0xcf   : > { %v505_v44 = vpop.f32.mrf.mxu1  ;;  %v529_v45 = vpop.f32.mrf.mxu2 }
  0xd0   : > { %v506_v46 = vadd.f32 %v505_v44, %v482_v43 }
  0xd2   : > { %v530_v48 = vadd.f32 %v529_v45, %v506_v46 }
  0xd4   : > { %v552_v50 = vadd.f32 %v551_v47, %v530_v48 }
  0xd6   : > { %v554_v51 = vadd.f32 %v552_v50, %v249_v49 }
  0xd8   : > { %556 = vst.msk [vmem:[%s1032_s27] sm:$0xf] %vm245_vm0, %v554_v51 }
  0xd9   : > { %864 = shalt.err (!%p861_p13)
}
  0xda   : > { %713 = dma.vmem_to_hbm [thread:$0]  (%p992_p9), %s573_s8, 64, %s575_s15, %s558_s12  }
  0xdb PF: > { %s586_s19 = sand.u32 1, %s903_s9   ;;  %p723_p0 = pnand %p692_p12, %p999_p11 }
  0xdc   : > { %s587_s26 = scalar_lea.sflag [#allocation4], %s586_s19 }
  0xdd   : > { %p724_p1 = pneg %p723_p0 }
  0xdf   : > { %898 = dma.done.wait (%p724_p1), %s587_s26, 64  }
  0xe0   : > { %900 = vsyncadd (%p724_p1), %s587_s26, 4294967232  ;;  %s21_s14 = sadd.s32 1, %s923_s14   ;;  %s1085_s9 = smov %s907_s10 }
  0xe1   : > { %p18_p2 = scmp.ge.s32.totalorder %s21_s14, 4   ;;  %s1086_s10 = smov %s911_s11 }
  0xe2   : > { %s1087_s11 = smov %s997_s23  ;;  %s1088_s12 = smov %s919_s13 }
  0xe3   : > { %s1089_s13 = smov %s1091_s17  ;;  %20 = sbr.rel (!%p18_p2) target bundleno = 8 (0x8), region = 90 }
  0xe8   :  { %593 = vsyncpa [#allocation3], 1 }
  0xe9   :  { %595 = vsyncpa [#allocation3 + $0x1], 1 }
  0xea   :  { %596 = vsyncpa [#allocation6], 1 }
  0xeb   :  { %598 = vsyncpa [#allocation6 + $0x1], 1 }
  0xec   :  { %599 = vsyncpa [#allocation4], 1 }
  0xed   :  { %601 = vsyncpa [#allocation4 + $0x1], 1 }

</bundles_post_ra>
